<compile_context>
chip_gen: v7x
topology: tpu7x:2x2x1
jax: 0.10.0
libtpu: 0.0.40
codegen_flags: <defaults>
</compile_context>

<pallas_src>
import math

import jax
import jax.numpy as jnp
from jax import lax
from jax.experimental import pallas as pl
from jax.experimental.pallas import tpu as pltpu


def _round_up(x: int, m: int) -> int:
    return ((x + m - 1) // m) * m


def _choose_tk(d: int) -> int:
    """Single K block when small; else a multiple-of-128 divisor of d near 4096."""
    if d <= 4096:
        return d
    for t in range(4096, 127, -128):
        if d % t == 0:
            return t
    return 4096  # fall back: K gets zero-padded up to a multiple of 4096


def _linear_cat_kernel(x_ref, w_ref, o_ref, acc_ref):
    """Grid = (row_tiles, k_tiles).

    x_ref:   (tm, tk)        input rows tile (f32 in HBM)
    w_ref:   (n_cls, tk)     weight tile, class-major, un-padded class dim (bf16)
    o_ref:   (tm, 2, n_cls)  [:, 0, :] zeros half, [:, 1, :] logits half
    acc_ref: (tm, n_cls)     f32 accumulator scratch (persists across k)
    """
    k = pl.program_id(1)

    @pl.when(k == 0)
    def _init():
        acc_ref[...] = jnp.zeros_like(acc_ref)

    x = x_ref[...]
    w = w_ref[...]
    if x.dtype != w.dtype:
        x = x.astype(w.dtype)  # bf16 MXU inputs; accumulation stays f32 below.

    # x @ w.T (weight consumed un-transposed; contract dim 1 of both operands).
    acc_ref[...] += lax.dot_general(
        x, w,
        dimension_numbers=(((1,), (1,)), ((), ())),
        preferred_element_type=jnp.float32,
    )

    @pl.when(k == pl.num_programs(1) - 1)
    def _finalize():
        tm, n_cls = acc_ref.shape
        o_ref[:, 0, :] = jnp.zeros((tm, n_cls), o_ref.dtype)
        o_ref[:, 1, :] = acc_ref[...].astype(o_ref.dtype)


def linear_forward(x_nchw: jax.Array, weight: jax.Array) -> jax.Array:
    """x_nchw: (B, C, H, W); weight: (n_cls, d) (bf16 or f32) with d = C*H*W.

    Returns (B, 2*n_cls) f32 = cat([zeros, x_flat @ weight.T], axis=1).
    """
    b = x_nchw.shape[0]
    d = int(math.prod(x_nchw.shape[1:]))
    n_cls, d_w = weight.shape
    assert d_w == d

    x_flat = x_nchw.reshape(b, d)  # same as torch .view(B, -1)

    # ---- tiling -------------------------------------------------------------
    tk = _choose_tk(d)
    d_pad = _round_up(d, tk)

    # Row tile: a single tile when possible (no row pad, weight fetched once);
    # otherwise 256 rows (MXU-friendly on v6e/v7x) with each x buffer <= ~4 MiB
    # so double-buffering stays inside v5e's 16 MiB default scoped VMEM.
    x_bytes = x_flat.dtype.itemsize
    max_tm = max(8, (4 * 1024 * 1024) // (tk * x_bytes))
    if b <= max_tm:
        tm, b_pad = b, b               # block dim == full dim -> legal, no pad
    else:
        tm = 256 if max_tm >= 256 else max(8, (max_tm // 8) * 8)
        b_pad = _round_up(b, tm)

    # Gated padding (entirely skipped in the common aligned case).
    if (b_pad, d_pad) != (b, d):
        x_flat = jnp.pad(x_flat, ((0, b_pad - b), (0, d_pad - d)))
    w_in = weight
    if d_pad != d:
        # TODO(synk): for huge d with no nice divisor, pre-pad the weight once
        # at parameter creation instead of per call.
        w_in = jnp.pad(weight, ((0, 0), (0, d_pad - d)))

    grid = (b_pad // tm, d_pad // tk)

    cost = pl.CostEstimate(
        flops=2 * b * d * n_cls,
        transcendentals=0,
        bytes_accessed=(x_flat.size * x_flat.dtype.itemsize
                        + w_in.size * w_in.dtype.itemsize
                        + b * 2 * n_cls * 4),
    )

    out3 = pl.pallas_call(
        _linear_cat_kernel,
        out_shape=jax.ShapeDtypeStruct((b_pad, 2, n_cls), jnp.float32),
        grid=grid,
        in_specs=[
            pl.BlockSpec((tm, tk), lambda i, k: (i, k)),
            # Class dim is NOT padded; with k_tiles == 1 (common case) the block
            # index is constant, so the weight is DMA'd exactly once.
            pl.BlockSpec((n_cls, tk), lambda i, k: (0, k)),
        ],
        out_specs=pl.BlockSpec((tm, 2, n_cls), lambda i, k: (i, 0, 0)),
        scratch_shapes=[pltpu.VMEM((tm, n_cls), jnp.float32)],
        compiler_params=pltpu.CompilerParams(
            dimension_semantics=("parallel", "arbitrary"),
        ),
        cost_estimate=cost,
    )(x_flat, w_in)

    # (b, 2, n_cls) -> (b, 2*n_cls) reproduces cat([zeros, logits], dim=1);
    # the reshape is layout-compatible (free).
    return out3[:b].reshape(b, 2 * n_cls)


if __name__ == "__main__":
    # Small shapes consistent with the module: NCHW input, n_cls classes.
    B, C, H, W = 2, 4, 16, 16
    n_cls_requested = 10
    n_cls = 1 if n_cls_requested == 2 else n_cls_requested
    d = C * H * W

    key = jax.random.PRNGKey(0)
    kx, kw = jax.random.split(key)
    x = jax.random.normal(kx, (B, C, H, W), dtype=jnp.float32)
    # Deterministic init matching nn.Linear's default U(-1/sqrt(d), 1/sqrt(d)).
    bound = 1.0 / math.sqrt(d)
    w_f32 = jax.random.uniform(
        kw, (n_cls, d), dtype=jnp.float32, minval=-bound, maxval=bound
    )
    # Carry the weight in bf16 (one-time cast outside the hot path); the kernel
    # still accumulates in f32.
    weight = w_f32.astype(jnp.bfloat16)

    out = linear_forward(x, weight)
    out = jax.block_until_ready(out)

    # Sanity check against a plain JAX reference; tolerance covers bf16 MXU
    # inputs with f32 accumulation.
    ref_logits = x.reshape(B, -1) @ weight.astype(jnp.float32).T
    ref = jnp.concatenate([jnp.zeros_like(ref_logits), ref_logits], axis=1)
    assert out.shape == (B, 2 * n_cls), out.shape
    assert jnp.allclose(out, ref, atol=2e-2, rtol=2e-2), "mismatch vs reference"

    print("KERNEL_OK")
</pallas_src>

<mosaic_0001>
module attributes {stable_mosaic.version = 11 : i64} {
  func.func @_linear_cat_kernel(%arg0: i32, %arg1: i32, %arg2: memref<2x1024xf32, #tpu.memory_space<vmem>>, %arg3: memref<10x1024xbf16, #tpu.memory_space<vmem>>, %arg4: memref<2x2x10xf32, #tpu.memory_space<vmem>>, %arg5: memref<2x10xf32, #tpu.memory_space<vmem>>) attributes {dimension_semantics = [#tpu.dimension_semantics<parallel>, #tpu.dimension_semantics<arbitrary>], iteration_bounds = array<i64: 1, 1>, scalar_prefetch = 0 : i64, scratch_operands = 1 : i64, tpu.core_type = #tpu.core_type<tc>, window_params = [{transform_indices = @transform_0, window_bounds = array<i64: 2, 1024>}, {transform_indices = @transform_1, window_bounds = array<i64: 10, 1024>}, {transform_indices = @transform_2, window_bounds = array<i64: 2, 2, 10>}]} {
    %c0_i32 = arith.constant 0 : i32
    %0 = arith.cmpi eq, %arg1, %c0_i32 : i32
    %1 = arith.extui %0 : i1 to i32
    %c0_i32_0 = arith.constant 0 : i32
    %2 = arith.cmpi ne, %1, %c0_i32_0 : i32
    scf.if %2 {
      %cst_10 = arith.constant 0.000000e+00 : f32
      %13 = vector.broadcast %cst_10 : f32 to vector<2x10xf32>
      %c0_11 = arith.constant 0 : index
      %c0_12 = arith.constant 0 : index
      %14 = vector.load %arg5[%c0_11, %c0_12] : memref<2x10xf32, #tpu.memory_space<vmem>>, vector<2x10xf32>
      tpu.vector_store %arg5[%c0_11, %c0_12], %13 {strides = array<i32>} : memref<2x10xf32, #tpu.memory_space<vmem>>, vector<2x10xf32>,
    } else {
    }
    %c0 = arith.constant 0 : index
    %c0_1 = arith.constant 0 : index
    %3 = vector.load %arg2[%c0, %c0_1] : memref<2x1024xf32, #tpu.memory_space<vmem>>, vector<2x1024xf32>
    %c0_2 = arith.constant 0 : index
    %c0_3 = arith.constant 0 : index
    %4 = vector.load %arg3[%c0_2, %c0_3] : memref<10x1024xbf16, #tpu.memory_space<vmem>>, vector<10x1024xbf16>
    %5 = arith.truncf %3 : vector<2x1024xf32> to vector<2x1024xbf16>
    %c0_4 = arith.constant 0 : index
    %c0_5 = arith.constant 0 : index
    %6 = vector.load %arg5[%c0_4, %c0_5] : memref<2x10xf32, #tpu.memory_space<vmem>>, vector<2x10xf32>
    %cst = arith.constant dense<0.000000e+00> : vector<2x10xf32>
    %7 = tpu.matmul %5, %4, %cst {dimension_numbers = #tpu.dot_dimension_numbers<[1], [1], [0], [0], [0, 0, 1, 0], [], []>} : vector<2x1024xbf16>, vector<10x1024xbf16>, vector<2x10xf32> -> vector<2x10xf32>
    %8 = arith.addf %6, %7 : vector<2x10xf32>
    %c0_6 = arith.constant 0 : index
    %c0_7 = arith.constant 0 : index
    %9 = vector.load %arg5[%c0_6, %c0_7] : memref<2x10xf32, #tpu.memory_space<vmem>>, vector<2x10xf32>
    tpu.vector_store %arg5[%c0_6, %c0_7], %8 {strides = array<i32>} : memref<2x10xf32, #tpu.memory_space<vmem>>, vector<2x10xf32>,
    %c0_i32_8 = arith.constant 0 : i32
    %10 = arith.cmpi eq, %arg1, %c0_i32_8 : i32
    %11 = arith.extui %10 : i1 to i32
    %c0_i32_9 = arith.constant 0 : i32
    %12 = arith.cmpi ne, %11, %c0_i32_9 : i32
    scf.if %12 {
      %cst_10 = arith.constant 0.000000e+00 : f32
      %13 = vector.broadcast %cst_10 : f32 to vector<2x10xf32>
      %c0_11 = arith.constant 0 : index
      %c0_12 = arith.constant 0 : index
      %c0_13 = arith.constant 0 : index
      %14 = vector.load %arg4[%c0_11, %c0_12, %c0_13] : memref<2x2x10xf32, #tpu.memory_space<vmem>>, vector<2x1x10xf32>
      %15 = vector.shape_cast %14 : vector<2x1x10xf32> to vector<2x10xf32>
      %16 = vector.shape_cast %13 : vector<2x10xf32> to vector<2x1x10xf32>
      tpu.vector_store %arg4[%c0_11, %c0_12, %c0_13], %16 {strides = array<i32>} : memref<2x2x10xf32, #tpu.memory_space<vmem>>, vector<2x1x10xf32>,
      %c0_14 = arith.constant 0 : index
      %c0_15 = arith.constant 0 : index
      %17 = vector.load %arg5[%c0_14, %c0_15] : memref<2x10xf32, #tpu.memory_space<vmem>>, vector<2x10xf32>
      %c0_16 = arith.constant 0 : index
      %c1 = arith.constant 1 : index
      %c0_17 = arith.constant 0 : index
      %18 = vector.load %arg4[%c0_16, %c1, %c0_17] : memref<2x2x10xf32, #tpu.memory_space<vmem>>, vector<2x1x10xf32>
      %19 = vector.shape_cast %18 : vector<2x1x10xf32> to vector<2x10xf32>
      %20 = vector.shape_cast %17 : vector<2x10xf32> to vector<2x1x10xf32>
      tpu.vector_store %arg4[%c0_16, %c1, %c0_17], %20 {strides = array<i32>} : memref<2x2x10xf32, #tpu.memory_space<vmem>>, vector<2x1x10xf32>,
    } else {
    }
    return
  }
  func.func @transform_0(%arg0: i32, %arg1: i32) -> (i32, i32) {
    %c0_i32 = arith.constant 0 : i32
    return %arg0, %arg1 : i32, i32
  }
  func.func @transform_1(%arg0: i32, %arg1: i32) -> (i32, i32) {
    %c0_i32 = arith.constant 0 : i32
    %c0_i32_0 = arith.constant 0 : i32
    return %c0_i32, %arg1 : i32, i32
  }
  func.func @transform_2(%arg0: i32, %arg1: i32) -> (i32, i32, i32) {
    %c0_i32 = arith.constant 0 : i32
    %c0_i32_0 = arith.constant 0 : i32
    %c0_i32_1 = arith.constant 0 : i32
    return %arg0, %c0_i32, %c0_i32_0 : i32, i32, i32
  }
}

</mosaic_0001>

<bundles_post_ra>
// kernel: tpu_custom_call.1
= control target key start
LH: loop header
LB: loop body
LE: loop exit
PB: predicated region body
PF: predicated region fallthrough
CT: control target
= control target key end

     0   :  { %7 = vsyncpa [#allocation4], 0  ;;  %s535_s0 = inlined_call_operand.hbm [shape: f32[2,1024], index: 0, kind: input, shape index: {}]   ;;  %s536_s1 = inlined_call_operand.hbm [shape: bf16[10,1024], index: 1, kind: input, shape index: {}]   ;;  %s537_s2 = inlined_call_operand.hbm [shape: f32[2,2,10], index: 2, kind: output, shape index: {}]  }
   0x1   :  { %8 = vsyncpa [#allocation7], 0 }
   0x2   :  { %9 = vsyncpa [#allocation5], 0  ;;  %s455_s9 = smov [#allocation3]   ;;  %s456_s11 = smov [#allocation6]  }
   0x3   :  { %s16_s10 = sshll.u32 %s455_s9, 4  ;;  %s25_s12 = sshll.u32 %s456_s11, 4  ;;  %s17_s10 = int_to_ptr.vmem [resolvable:$true] %s16_s10  ;;  %s479_s12 = int_to_ptr.vmem [resolvable:$true] %s25_s12 }
   0x4   :  { %s383_s15 = scalar_lea.hbm %s535_s0, 256 }
   0x5   :  { %p384_p0 = scmp.ne.s32.totalorder %s535_s0, %s383_s15  ;;  %p387_p1 = scmp.lt.u32.totalorder %s383_s15, %s535_s0 }
   0x7   :  { %p389_p2 = pnand %p387_p1, %p384_p0 }
   0x9   :  { %392 = shalt.err (!%p389_p2)
}
   0xa   :  { %s393_s20 = scalar_lea.vmem %s17_s10, 256  ;;  %p398_p4 = scmp.lt.s32.totalorder %s17_s10, %s17_s10 }
   0xb   :  { %p394_p3 = scmp.ne.s32.totalorder %s17_s10, %s393_s20  ;;  %p399_p5 = scmp.lt.s32.totalorder %s393_s20, %s393_s20 }
   0xd   :  { %p400_p6 = por %p399_p5, %p398_p4 }
   0xf   :  { %p401_p7 = pnand %p400_p6, %p394_p3 }
  0x11   :  { %404 = shalt.err (!%p401_p7)
}
  0x12   :  { %19 = dma.hbm_to_vmem [thread:$0]  %s535_s0, 256, %s17_s10, [#allocation4]  }
  0x13   :  { %s405_s25 = scalar_lea.hbm %s536_s1, 1024 }
  0x14   :  { %p406_p8 = scmp.ne.s32.totalorder %s536_s1, %s405_s25  ;;  %p409_p9 = scmp.lt.u32.totalorder %s405_s25, %s536_s1 }
  0x16   :  { %p411_p10 = pnand %p409_p9, %p406_p8 }
  0x18   :  { %414 = shalt.err (!%p411_p10)
}
  0x19   :  { %s415_s30 = scalar_lea.vmem %s479_s12, 1024  ;;  %p420_p12 = scmp.lt.s32.totalorder %s479_s12, %s479_s12 }
  0x1a   :  { %p416_p11 = scmp.ne.s32.totalorder %s479_s12, %s415_s30  ;;  %p421_p13 = scmp.lt.s32.totalorder %s415_s30, %s415_s30 }
  0x1c   :  { %p422_p0 = por %p421_p13, %p420_p12 }
  0x1e   :  { %p423_p1 = pnand %p422_p0, %p416_p11 }
  0x20   :  { %426 = shalt.err (!%p423_p1)
}
  0x21   :  { %s457_s0 = smov 512   ;;  %s458_s3 = smov 32  }
  0x22   :  { %31 = dma.hbm_to_vmem [thread:$0]  %s536_s1, 1024, %s479_s12, [#allocation7], %s457_s0, %s457_s0, %s458_s3  }
  0x23   :  { %449 = dma.done.wait [#allocation4], 256  }
  0x24   :  { %450 = vsyncadd [#allocation4], 4294967040 }
  0x25   :  { %451 = dma.done.wait [#allocation7], 1024  }
  0x26   :  { %452 = vsyncadd [#allocation7], 4294966272  ;;  %v61_v0 = vlaneseq  ;;  %v459_v1 = vmov 1983009808   ;;  %v47_v6 = vld [vmem:[#allocation6] sm:$0xff]  ;;  %v48_v8 = vld [vmem:[#allocation6 + $0x8] sm:$0xff] }
  0x27   :  { %v59_v2 = vunpack.c.l.s4 %v459_v1  ;;  %v51_v7 = vld [vmem:[#allocation6 + $0x20] sm:$0x11]  ;;  %v52_v10 = vld [vmem:[#allocation6 + $0x28] sm:$0x11]  ;;  %v45_v12 = vld [vmem:[#allocation3] sm:$0xff]  ;;  %vm43_vm0 = vcmask 74752  }
  0x28   :  { %v511_v3 = vshrl.u32 %v61_v0, 7  ;;  %v364_v9 = vcombine.high %v47_v6, %v51_v7  ;;  %v363_v11 = vcombine.low %v47_v6, %v51_v7  ;;  %v49_v13 = vld [vmem:[#allocation6 + $0x10] sm:$0xff]  ;;  %v366_v14 = vcombine.high %v48_v8, %v52_v10  ;;  %v50_v19 = vld [vmem:[#allocation6 + $0x18] sm:$0xff]  ;;  %s462_s1 = smov [#allocation8]  }
  0x29   :  { %v60_v4 = vunpack.c.0.s8 %v59_v2  ;;  %v365_v15 = vcombine.low %v48_v8, %v52_v10  ;;  %v57_v17 = vcombine.high %v45_v12, %v45_v12  ;;  %v53_v18 = vld [vmem:[#allocation6 + $0x30] sm:$0x11]  ;;  %v54_v20 = vld [vmem:[#allocation6 + $0x38] sm:$0x11]  ;;  %v460_v42 = vmov 0.0   ;;  %s350_s6 = sshll.u32 %s462_s1, 4  ;;  %s351_s6 = int_to_ptr.vmem [resolvable:$true] %s350_s6 }
  0x2a   :  { %148 = vmatprep.subr.bf16.mxu0 %v364_v9  ;;  %v368_v21 = vcombine.high %v49_v13, %v53_v18  ;;  %v370_v22 = vcombine.high %v50_v19, %v54_v20  ;;  %v46_v23 = vld [vmem:[#allocation3 + $0x8] sm:$0xff]  ;;  %188 = vmatprep.subr.bf16.mxu1 %v366_v14  ;;  %v367_v35 = vcombine.low %v49_v13, %v53_v18  ;;  %vm314_vm1 = vcmask 73728   ;;  %s427_s7 = scalar_lea.vmem %s351_s6, 64  ;;  %p432_p3 = scmp.lt.s32.totalorder %s351_s6, %s351_s6 }
  0x2b   :  { %v63_v5 = vsub.s32 %v60_v4, %v511_v3  ;;  %149 = vmatpush1.bf16.xpose.msra.mxu0 %v363_v11  ;;  %189 = vmatpush1.bf16.xpose.msra.mxu1 %v365_v15  ;;  %v74_v27 = vcombine.high %v46_v23, %v46_v23  ;;  %v369_v36 = vcombine.low %v50_v19, %v54_v20  ;;  %v461_v59 = vmov 1966171168   ;;  %p428_p2 = scmp.ne.s32.totalorder %s351_s6, %s427_s7  ;;  %p433_p4 = scmp.lt.s32.totalorder %s427_s7, %s427_s7 }
  0x2c   :  { %228 = vmatprep.subr.bf16.mxu0 %v368_v21  ;;  %268 = vmatprep.subr.bf16.mxu1 %v370_v22  ;;  %44 = vst.msk [vmem:[#allocation2] sm:$0x3] %vm43_vm0, %v460_v42  ;;  %v328_v60 = vunpack.c.l.s4 %v461_v59 }
  0x2d   :  { %v64_v16 = vrot.slane %v45_v12, %v63_v5  ;;  %v71_v25 = vrot.slane %v57_v17, %v63_v5  ;;  %v81_v26 = vrot.slane %v46_v23, %v63_v5  ;;  %v88_v32 = vrot.slane %v74_v27, %v63_v5  ;;  %315 = vst.msk [vmem:[#allocation8] sm:$0x1] %vm314_vm1, %v460_v42  ;;  %p434_p5 = por %p433_p4, %p432_p3 }
  0x2e   :  { %316 = vst.msk [vmem:[#allocation8 + $0x2] sm:$0x1] %vm314_vm1, %v460_v42  ;;  %v329_v2 = vunpack.c.0.s8 %v328_v60 }
  0x2f   :  { %v72_v24 = vcombine.high %v64_v16, %v64_v16  ;;  %v73_v29 = vcombine.high %v71_v25, %v71_v25  ;;  %v99_v30 = vpack.c.bf16 %v64_v16, %v64_v16  ;;  %v89_v31 = vcombine.high %v81_v26, %v81_v26  ;;  %p435_p6 = pnand %p434_p5, %p428_p2 }
  0x30   :  { %v101_v34 = vpack.c.bf16 %v71_v25, %v71_v25  ;;  %v90_v38 = vcombine.high %v88_v32, %v88_v32  ;;  %v103_v40 = vpack.c.bf16 %v81_v26, %v81_v26  ;;  %v105_v41 = vpack.c.bf16 %v88_v32, %v88_v32 }
  0x31   :  { %v100_v28 = vpack.c.bf16 %v72_v24, %v72_v24  ;;  %v102_v33 = vpack.c.bf16 %v73_v29, %v73_v29  ;;  %v104_v37 = vpack.c.bf16 %v89_v31, %v89_v31  ;;  %v332_v4 = vsub.s32 %v329_v2, %v511_v3 }
  0x32   :  { %v106_v39 = vpack.c.bf16 %v90_v38, %v90_v38 }
  0x33   :  { %180 = vmatprep.mubr.bf16.mxu0 %v100_v28  ;;  %220 = vmatprep.mubr.bf16.mxu1 %v102_v33  ;;  %v107_v56 = vld [vmem:[#allocation2] sm:$0x3] }
  0x34   :  { %181 = vmatmul.mubr.bf16.vlgmr.msra.gmra.mrb[0].mxu0 %v99_v30  ;;  %221 = vmatmul.mubr.bf16.vlgmr.msra.gmra.mrb[0].mxu1 %v101_v34 }
  0x35   :  { %229 = vmatpush1.bf16.xpose.msra.mxu0 %v367_v35  ;;  %269 = vmatpush1.bf16.xpose.msra.mxu1 %v369_v36 }
  0x36   :  { %260 = vmatprep.mubr.bf16.mxu0 %v104_v37  ;;  %300 = vmatprep.mubr.bf16.mxu1 %v106_v39 }
  0x3c   :  { %261 = vmatmul.mubr.bf16.vlgmr.msra.gmra.mrb[4].mxu0 %v103_v40  ;;  %301 = vmatmul.mubr.bf16.vlgmr.msra.gmra.mrb[4].mxu1 %v105_v41 }
 0x107   :  { %v182_v43 = vpop.f32.mrb[0].mxu0  ;;  %v222_v44 = vpop.f32.mrb[0].mxu1 }
 0x108   :  { %v184_v45 = vpop.f32.mrb[1].mxu0  ;;  %v223_v46 = vadd.f32 %v222_v44, %v182_v43  ;;  %v224_v47 = vpop.f32.mrb[1].mxu1 }
 0x109   :  { %v185_v48 = vpop.f32.mrb[2].mxu0  ;;  %v225_v49 = vpop.f32.mrb[2].mxu1 }
 0x10a   :  { %v186_v50 = vpop.f32.mrb[3].mxu0  ;;  %v226_v51 = vpop.f32.mrb[3].mxu1 }
 0x10f   :  { %v262_v52 = vpop.f32.mrb[4].mxu0  ;;  %v302_v54 = vpop.f32.mrb[4].mxu1 }
 0x110   :  { %v263_v53 = vadd.f32 %v262_v52, %v223_v46  ;;  %v264_v55 = vpop.f32.mrb[5].mxu0  ;;  %v304_v57 = vpop.f32.mrb[5].mxu1 }
 0x111   :  { %v265_v58 = vpop.f32.mrb[6].mxu0  ;;  %v305_v62 = vpop.f32.mrb[6].mxu1 }
 0x112   :  { %v303_v61 = vadd.f32 %v302_v54, %v263_v53  ;;  %v266_v63 = vpop.f32.mrb[7].mxu0  ;;  %v306_v0 = vpop.f32.mrb[7].mxu1 }
 0x114   :  { %v308_v1 = vadd.f32 %v303_v61, %v107_v56 }
 0x116   :  { %310 = vst.msk [vmem:[#allocation2] sm:$0x3] %vm43_vm0, %v308_v1 }
 0x11d   :  { %v371_v5 = vld.sshfl [vmem:[#allocation2] sm:$0x11 pattern:$0x75316420] }
 0x11e   :  { %v326_v6 = vcombine.high %v371_v5, %v371_v5  ;;  %v333_v7 = vrot.slane %v371_v5, %v332_v4 }
 0x120   :  { %v340_v8 = vrot.slane %v326_v6, %v332_v4  ;;  %343 = vst.msk [vmem:[#allocation8 + $0x1] sm:$0x1] %vm314_vm1, %v333_v7 }
 0x122   :  { %344 = vst.msk [vmem:[#allocation8 + $0x3] sm:$0x1] %vm314_vm1, %v340_v8 }
 0x123   :  { %438 = shalt.err (!%p435_p6)
}
 0x124   :  { %s439_s10 = scalar_lea.hbm %s537_s2, 64 }
 0x125   :  { %p440_p7 = scmp.ne.s32.totalorder %s537_s2, %s439_s10  ;;  %p443_p8 = scmp.lt.u32.totalorder %s439_s10, %s537_s2 }
 0x127   :  { %p445_p9 = pnand %p443_p8, %p440_p7 }
 0x129   :  { %448 = shalt.err (!%p445_p9)
}
 0x12a   :  { %s463_s15 = smov 2  }
 0x12b   :  { %356 = dma.vmem_to_hbm [thread:$0]  %s351_s6, 64, %s537_s2, [#allocation5], %s458_s3, %s458_s3, %s463_s15  }
 0x12c   :  { %453 = dma.done.wait [#allocation5], 64  }
 0x12d   :  { %454 = vsyncadd [#allocation5], 4294967232 }
 0x12e   :  { %360 = vsyncpa [#allocation4], 1 }
 0x12f   :  { %361 = vsyncpa [#allocation7], 1 }
 0x130   :  { %362 = vsyncpa [#allocation5], 1 }

</bundles_post_ra>
